<compile_context>
chip_gen: v6e
topology: v6e:2x2x1
jax: 0.10.0
libtpu: 0.0.40
codegen_flags: <defaults>
</compile_context>

<pallas_src>
import math
from functools import partial

import jax
import jax.numpy as jnp
from jax.experimental import pallas as pl
from jax.experimental.pallas import tpu as pltpu


# ----------------------------------------------------------------------------
# helpers
# ----------------------------------------------------------------------------
def _pick_tile(dim: int, target: int, mults=(128, 16, 8)) -> int:
    """Largest tile <= target dividing `dim`, multiple of one of `mults`
    (tried in order). Falls back to the full dimension (always legal)."""
    if dim <= target:
        return dim
    for mult in mults:
        t = (target // mult) * mult
        while t >= mult:
            if dim % t == 0:
                return t
            t -= mult
    return dim


def _vmem_limit_bytes() -> int:
    """Generation-aware scoped-VMEM budget (~3/4 of physical, capped)."""
    try:
        cap = int(pltpu.get_tpu_info().vmem_capacity_bytes)
    except Exception:
        cap = 64 * 1024 * 1024          # conservative (v7x physical)
    return min((cap * 3) // 4, 100 * 1024 * 1024)


_VMEM_LIMIT = _vmem_limit_bytes()


# ----------------------------------------------------------------------------
# Tiled matmul kernels (bf16 operands, f32 accumulation)
# ----------------------------------------------------------------------------
def _matmul_kernel_f32_out(x_ref, w_ref, o_ref):
    # f32 output: accumulate directly into the resident output block.
    @pl.when(pl.program_id(2) == 0)
    def _():
        o_ref[...] = jnp.zeros_like(o_ref)

    o_ref[...] += jnp.dot(x_ref[...], w_ref[...],
                          preferred_element_type=jnp.float32)


def _matmul_kernel_scratch(x_ref, w_ref, o_ref, acc_ref):
    # non-f32 output: accumulate in an f32 scratch, cast once at the end.
    @pl.when(pl.program_id(2) == 0)
    def _():
        acc_ref[...] = jnp.zeros_like(acc_ref)

    acc_ref[...] += jnp.dot(x_ref[...], w_ref[...],
                            preferred_element_type=jnp.float32)

    @pl.when(pl.program_id(2) == pl.num_programs(2) - 1)
    def _():
        o_ref[...] = acc_ref[...].astype(o_ref.dtype)


def linear(x2d: jax.Array, w_t: jax.Array, out_dtype=jnp.float32,
           tm: int = 512, tn: int = 1024, tk: int = 512) -> jax.Array:
    """y = x2d @ w_t, with w_t stored pre-transposed as (in, out)."""
    M, K = x2d.shape
    K2, N = w_t.shape
    assert K == K2
    x2d = x2d.astype(jnp.bfloat16)
    w_t = w_t.astype(jnp.bfloat16)
    tm = _pick_tile(M, tm, (16, 8))
    tn = _pick_tile(N, tn, (128,))
    tk = _pick_tile(K, tk, (128,))
    grid = (M // tm, N // tn, K // tk)

    if jnp.dtype(out_dtype) == jnp.dtype(jnp.float32):
        kernel = _matmul_kernel_f32_out
        scratch = []
    else:
        kernel = _matmul_kernel_scratch
        scratch = [pltpu.VMEM((tm, tn), jnp.float32)]

    return pl.pallas_call(
        kernel,
        out_shape=jax.ShapeDtypeStruct((M, N), out_dtype),
        grid=grid,
        in_specs=[
            pl.BlockSpec((tm, tk), lambda i, j, k: (i, k)),
            pl.BlockSpec((tk, tn), lambda i, j, k: (k, j)),
        ],
        out_specs=pl.BlockSpec((tm, tn), lambda i, j, k: (i, j)),
        scratch_shapes=scratch,
        compiler_params=pltpu.CompilerParams(
            dimension_semantics=("parallel", "parallel", "arbitrary"),
            vmem_limit_bytes=_VMEM_LIMIT),
    )(x2d, w_t)


# ----------------------------------------------------------------------------
# Flash-attention kernel (causal, online softmax, GQA group folded per step)
# ----------------------------------------------------------------------------
def _flash_attn_kernel(q_ref, k_ref, v_ref, o_ref, q_scr, m_scr, l_scr,
                       acc_scr, *, scale, n_rep, tq, tkv):
    qi = pl.program_id(2)
    ki = pl.program_id(3)
    rows = n_rep * tq

    q_first = qi * tq                  # first query position of this q tile
    q_last = q_first + (tq - 1)        # last  query position of this q tile
    kv_first = ki * tkv                # first key position of this kv tile
    kv_last = kv_first + (tkv - 1)     # last  key position of this kv tile

    @pl.when(ki == 0)
    def _():
        # Pre-scaled Q for this q tile, reused across all KV steps.
        # Rows packed head-major: row = r*tq + t, query position = q_first + t.
        for r in range(n_rep):
            q_r = q_ref[0, 0, r].astype(jnp.float32) * scale
            q_scr[pl.ds(r * tq, tq), :] = q_r.astype(q_scr.dtype)
        m_scr[...] = jnp.full_like(m_scr, -jnp.inf)
        l_scr[...] = jnp.zeros_like(l_scr)
        acc_scr[...] = jnp.zeros_like(acc_scr)

    def _online_softmax_step(apply_mask):
        q = q_scr[...]                        # (rows, D)  bf16, pre-scaled
        k = k_ref[0, 0]                       # (tkv, D)   bf16
        v = v_ref[0, 0]                       # (tkv, D)   bf16
        # q @ k^T without materializing a transpose of k
        s = jax.lax.dot_general(
            q, k, (((1,), (1,)), ((), ())),
            preferred_element_type=jnp.float32)           # (rows, tkv) f32
        if apply_mask:
            row_iota = jax.lax.broadcasted_iota(jnp.int32, (rows, 1), 0)
            col_iota = jax.lax.broadcasted_iota(jnp.int32, (1, tkv), 1)
            row_pos = q_first + (row_iota % tq)
            col_pos = kv_first + col_iota
            s = jnp.where(col_pos <= row_pos, s, -1e30)
        m_prev = m_scr[...]
        m_new = jnp.maximum(m_prev, jnp.max(s, axis=-1, keepdims=True))
        alpha = jnp.exp(m_prev - m_new)
        p = jnp.exp(s - m_new)                             # f32 stats
        l_scr[...] = alpha * l_scr[...] + jnp.sum(p, axis=-1, keepdims=True)
        acc_scr[...] = alpha * acc_scr[...] + jnp.dot(
            p.astype(v.dtype), v, preferred_element_type=jnp.float32)
        m_scr[...] = m_new

    # Fast path: tile fully below the causal diagonal -> no mask work at all.
    @pl.when(kv_last <= q_first)
    def _():
        _online_softmax_step(apply_mask=False)

    # Diagonal band: partially masked but contributing tile.
    @pl.when(jnp.logical_and(kv_last > q_first, kv_first <= q_last))
    def _():
        _online_softmax_step(apply_mask=True)

    # Fully-masked tiles (kv_first > q_last) do nothing; their K/V block index
    # is clamped in the index_map so no DMA is issued for them either.

    @pl.when(ki == pl.num_programs(3) - 1)
    def _():
        inv = pl.reciprocal(l_scr[...], approx=True)
        o = (acc_scr[...] * inv).astype(o_ref.dtype)       # (rows, D)
        for r in range(n_rep):
            o_ref[0, 0, r] = o[r * tq:(r + 1) * tq, :]


def attention_core(q, k, v, tq_target: int = 256, tkv_target: int = 512):
    """q: (B, KVH, n_rep, S, D) bf16; k, v: (B, KVH, S, D) bf16.
    Returns (B, KVH, n_rep, S, D) bf16. Causal mask generated in-kernel."""
    B, KVH, R, S, D = q.shape
    scale = 1.0 / math.sqrt(D)
    tq = _pick_tile(S, tq_target, (16, 8))
    tkv = _pick_tile(S, tkv_target, (128, 16, 8))
    grid = (B, KVH, S // tq, S // tkv)
    rows = R * tq
    kernel = partial(_flash_attn_kernel, scale=scale, n_rep=R, tq=tq, tkv=tkv)

    def q_map(b, g, qi, ki):
        return (b, g, 0, qi, 0)

    def kv_map(b, g, qi, ki):
        # Clamp to the last block that can contribute under the causal mask;
        # above-diagonal steps then repeat the previous block index and Pallas
        # skips re-issuing the (useless) K/V DMA.
        return (b, g, jnp.minimum(ki, (qi * tq + tq - 1) // tkv), 0)

    return pl.pallas_call(
        kernel,
        out_shape=jax.ShapeDtypeStruct((B, KVH, R, S, D), jnp.bfloat16),
        grid=grid,
        in_specs=[
            pl.BlockSpec((1, 1, R, tq, D), q_map),
            pl.BlockSpec((1, 1, tkv, D), kv_map),
            pl.BlockSpec((1, 1, tkv, D), kv_map),
        ],
        out_specs=pl.BlockSpec((1, 1, R, tq, D), q_map),
        scratch_shapes=[
            pltpu.VMEM((rows, D), jnp.bfloat16),   # pre-scaled Q
            pltpu.VMEM((rows, 1), jnp.float32),    # running max  m
            pltpu.VMEM((rows, 1), jnp.float32),    # running sum  l
            pltpu.VMEM((rows, D), jnp.float32),    # output accumulator
        ],
        compiler_params=pltpu.CompilerParams(
            dimension_semantics=("parallel", "parallel", "parallel",
                                 "arbitrary"),
            vmem_limit_bytes=_VMEM_LIMIT),
    )(q, k, v)


# ----------------------------------------------------------------------------
# Glue (RoPE) in plain JAX
# ----------------------------------------------------------------------------
def apply_rotary_emb(xq, xk, cos, sin):
    """xq: (B,S,H,D), xk: (B,S,KVH,D); cos/sin: (S, D//2).
    Matches torch.view_as_complex pairing (x[..., 2j], x[..., 2j+1]);
    math in f32, result cast back to the input dtype."""
    def rot(x):
        xf = x.astype(jnp.float32)
        xr = xf[..., 0::2]
        xi = xf[..., 1::2]
        c = cos[None, :, None, :]
        s = sin[None, :, None, :]
        out_r = xr * c - xi * s
        out_i = xr * s + xi * c
        out = jnp.stack([out_r, out_i], axis=-1).reshape(x.shape)
        return out.astype(x.dtype)
    return rot(xq), rot(xk)


def precompute_freqs(head_dim, seq_len, theta=10000.0):
    freqs = 1.0 / (theta ** (jnp.arange(0, head_dim, 2, dtype=jnp.float32)
                             / head_dim))
    t = jnp.arange(seq_len, dtype=jnp.float32)
    angles = jnp.outer(t, freqs)           # (S, D//2)
    return jnp.cos(angles), jnp.sin(angles)


# ----------------------------------------------------------------------------
# Module
# ----------------------------------------------------------------------------
class AttentionPallas:
    """Forward-only port of the PyTorch Attention module (start_pos = 0)."""

    def __init__(self, dim, n_heads, n_kv_heads, key):
        self.dim = dim
        self.n_heads = n_heads
        self.n_kv_heads = n_kv_heads
        self.n_rep = n_heads // n_kv_heads
        self.head_dim = dim // n_heads
        k1, k2, k3, k4 = jax.random.split(key, 4)
        init = lambda k, o, i: 0.1 * jax.random.normal(k, (o, i), jnp.float32)
        # master weights, PyTorch layout (out_features, in_features)
        self.wq = init(k1, n_heads * self.head_dim, dim)
        self.wk = init(k2, n_kv_heads * self.head_dim, dim)
        self.wv = init(k3, n_kv_heads * self.head_dim, dim)
        self.wo = init(k4, dim, n_heads * self.head_dim)
        # fused + pre-transposed (in, out) bf16 copies for the kernels
        self.wqkv_t = jnp.concatenate([self.wq, self.wk, self.wv],
                                      axis=0).T.astype(jnp.bfloat16)
        self.wo_t = self.wo.T.astype(jnp.bfloat16)
        # TODO(synk): KV-cache write-back (cache_k/cache_v mutation across
        # calls) is stateful; with start_pos=0 the cache slice read back equals
        # xk/xv exactly, which is what is implemented here.
        # TODO(synk): RoPE and the surrounding layout transposes remain in XLA;
        # fusing them into the Pallas QKV epilogue is a further optimization.

    def __call__(self, x, cos, sin):
        B, S, _ = x.shape
        H, KVH, D, R = self.n_heads, self.n_kv_heads, self.head_dim, self.n_rep
        x2d = x.reshape(B * S, self.dim)

        # fused Q/K/V projection, bf16 output (halves writeback + re-read)
        qkv = linear(x2d, self.wqkv_t, out_dtype=jnp.bfloat16)
        q_end = H * D
        k_end = q_end + KVH * D
        xq = qkv[:, :q_end].reshape(B, S, H, D)
        xk = qkv[:, q_end:k_end].reshape(B, S, KVH, D)
        xv = qkv[:, k_end:].reshape(B, S, KVH, D)

        xq, xk = apply_rotary_emb(xq, xk, cos, sin)   # f32 math, bf16 out

        # GQA-folded layouts: q/o (B, KVH, n_rep, S, D), k/v (B, KVH, S, D)
        q = jnp.transpose(xq, (0, 2, 1, 3)).reshape(B, KVH, R, S, D)
        k = jnp.transpose(xk, (0, 2, 1, 3))
        v = jnp.transpose(xv, (0, 2, 1, 3))

        out = attention_core(q, k, v)                 # (B, KVH, R, S, D) bf16
        out = jnp.transpose(out, (0, 3, 1, 2, 4)).reshape(B * S, H * D)
        y = linear(out, self.wo_t, out_dtype=jnp.float32)
        return y.reshape(B, S, self.dim)


# ----------------------------------------------------------------------------
# Pure-JAX reference (mirrors the kernel's bf16 rounding points)
# ----------------------------------------------------------------------------
def reference_forward(attn, x, cos, sin, mask):
    B, S, _ = x.shape
    H, KVH, D, R = attn.n_heads, attn.n_kv_heads, attn.head_dim, attn.n_rep
    bfr = lambda a: a.astype(jnp.bfloat16).astype(jnp.float32)
    xb = bfr(x)
    xq = bfr(xb @ bfr(attn.wq).T).reshape(B, S, H, D)
    xk = bfr(xb @ bfr(attn.wk).T).reshape(B, S, KVH, D)
    xv = bfr(xb @ bfr(attn.wv).T).reshape(B, S, KVH, D)
    xq, xk = apply_rotary_emb(xq, xk, cos, sin)
    xq, xk = bfr(xq), bfr(xk)
    # repeat_kv
    xk = jnp.repeat(xk, R, axis=2)
    xv = jnp.repeat(xv, R, axis=2)
    q = jnp.transpose(xq, (0, 2, 1, 3))
    k = jnp.transpose(xk, (0, 2, 1, 3))
    v = jnp.transpose(xv, (0, 2, 1, 3))
    scores = jnp.einsum("bhqd,bhkd->bhqk", q, k) / math.sqrt(D)
    scores = scores + mask[None, None]
    probs = jax.nn.softmax(scores, axis=-1)
    out = jnp.einsum("bhqk,bhkd->bhqd", probs, v)
    out = bfr(jnp.transpose(out, (0, 2, 1, 3)).reshape(B, S, H * D))
    return out @ bfr(attn.wo).T


# ----------------------------------------------------------------------------
if __name__ == "__main__":
    key = jax.random.PRNGKey(0)
    # small ModelArgs-consistent shapes
    dim, n_heads, n_kv_heads = 32, 4, 2
    batch, seq = 2, 8
    head_dim = dim // n_heads

    kx, kw = jax.random.split(key)
    x = jax.random.normal(kx, (batch, seq, dim), jnp.float32)
    attn = AttentionPallas(dim, n_heads, n_kv_heads, kw)

    cos, sin = precompute_freqs(head_dim, seq)

    out = attn(x, cos, sin)
    out = jax.block_until_ready(out)

    # causal mask (start_pos = 0) for the pure-JAX reference only; the Pallas
    # kernel generates it internally via iota.
    row = jnp.arange(seq)[:, None]
    col = jnp.arange(seq)[None, :]
    mask = jnp.where(col <= row, 0.0, -jnp.inf).astype(jnp.float32)
    ref = reference_forward(attn, x, cos, sin, mask)

    assert out.shape == (batch, seq, dim)
    max_err = float(jnp.max(jnp.abs(out - ref)))
    assert jnp.allclose(out, ref, atol=2e-2, rtol=2e-2), f"max abs err {max_err}"

    print("KERNEL_OK")
</pallas_src>

<mosaic_0001>
module attributes {stable_mosaic.version = 11 : i64} {
  func.func @_matmul_kernel_scratch(%arg0: i32, %arg1: i32, %arg2: i32, %arg3: memref<16x32xbf16, #tpu.memory_space<vmem>>, %arg4: memref<32x64xbf16, #tpu.memory_space<vmem>>, %arg5: memref<16x64xbf16, #tpu.memory_space<vmem>>, %arg6: memref<16x64xf32, #tpu.memory_space<vmem>>) attributes {dimension_semantics = [#tpu.dimension_semantics<parallel>, #tpu.dimension_semantics<parallel>, #tpu.dimension_semantics<arbitrary>], iteration_bounds = array<i64: 1, 1, 1>, scalar_prefetch = 0 : i64, scratch_operands = 1 : i64, tpu.core_type = #tpu.core_type<tc>, window_params = [{transform_indices = @transform_0, window_bounds = array<i64: 16, 32>}, {transform_indices = @transform_1, window_bounds = array<i64: 32, 64>}, {transform_indices = @transform_2, window_bounds = array<i64: 16, 64>}]} {
    %c0_i32 = arith.constant 0 : i32
    %0 = arith.cmpi eq, %arg2, %c0_i32 : i32
    %1 = arith.extui %0 : i1 to i32
    %c0_i32_0 = arith.constant 0 : i32
    %2 = arith.cmpi ne, %1, %c0_i32_0 : i32
    scf.if %2 {
      %cst_10 = arith.constant 0.000000e+00 : f32
      %12 = vector.broadcast %cst_10 : f32 to vector<16x64xf32>
      %c0_11 = arith.constant 0 : index
      %c0_12 = arith.constant 0 : index
      %13 = vector.load %arg6[%c0_11, %c0_12] : memref<16x64xf32, #tpu.memory_space<vmem>>, vector<16x64xf32>
      tpu.vector_store %arg6[%c0_11, %c0_12], %12 {strides = array<i32>} : memref<16x64xf32, #tpu.memory_space<vmem>>, vector<16x64xf32>,
    } else {
    }
    %c0 = arith.constant 0 : index
    %c0_1 = arith.constant 0 : index
    %3 = vector.load %arg6[%c0, %c0_1] : memref<16x64xf32, #tpu.memory_space<vmem>>, vector<16x64xf32>
    %c0_2 = arith.constant 0 : index
    %c0_3 = arith.constant 0 : index
    %4 = vector.load %arg3[%c0_2, %c0_3] : memref<16x32xbf16, #tpu.memory_space<vmem>>, vector<16x32xbf16>
    %c0_4 = arith.constant 0 : index
    %c0_5 = arith.constant 0 : index
    %5 = vector.load %arg4[%c0_4, %c0_5] : memref<32x64xbf16, #tpu.memory_space<vmem>>, vector<32x64xbf16>
    %cst = arith.constant dense<0.000000e+00> : vector<16x64xf32>
    %6 = tpu.matmul %4, %5, %cst {dimension_numbers = #tpu.dot_dimension_numbers<[1], [0], [0], [1], [0, 0, 1, 1], [], []>} : vector<16x32xbf16>, vector<32x64xbf16>, vector<16x64xf32> -> vector<16x64xf32>
    %7 = arith.addf %3, %6 : vector<16x64xf32>
    %c0_6 = arith.constant 0 : index
    %c0_7 = arith.constant 0 : index
    %8 = vector.load %arg6[%c0_6, %c0_7] : memref<16x64xf32, #tpu.memory_space<vmem>>, vector<16x64xf32>
    tpu.vector_store %arg6[%c0_6, %c0_7], %7 {strides = array<i32>} : memref<16x64xf32, #tpu.memory_space<vmem>>, vector<16x64xf32>,
    %c0_i32_8 = arith.constant 0 : i32
    %9 = arith.cmpi eq, %arg2, %c0_i32_8 : i32
    %10 = arith.extui %9 : i1 to i32
    %c0_i32_9 = arith.constant 0 : i32
    %11 = arith.cmpi ne, %10, %c0_i32_9 : i32
    scf.if %11 {
      %c0_10 = arith.constant 0 : index
      %c0_11 = arith.constant 0 : index
      %12 = vector.load %arg6[%c0_10, %c0_11] : memref<16x64xf32, #tpu.memory_space<vmem>>, vector<16x64xf32>
      %13 = arith.truncf %12 : vector<16x64xf32> to vector<16x64xbf16>
      %c0_12 = arith.constant 0 : index
      %c0_13 = arith.constant 0 : index
      %14 = vector.load %arg5[%c0_12, %c0_13] : memref<16x64xbf16, #tpu.memory_space<vmem>>, vector<16x64xbf16>
      tpu.vector_store %arg5[%c0_12, %c0_13], %13 {strides = array<i32>} : memref<16x64xbf16, #tpu.memory_space<vmem>>, vector<16x64xbf16>,
    } else {
    }
    return
  }
  func.func @transform_0(%arg0: i32, %arg1: i32, %arg2: i32) -> (i32, i32) {
    %c0_i32 = arith.constant 0 : i32
    return %arg0, %arg2 : i32, i32
  }
  func.func @transform_1(%arg0: i32, %arg1: i32, %arg2: i32) -> (i32, i32) {
    %c0_i32 = arith.constant 0 : i32
    return %arg2, %arg1 : i32, i32
  }
  func.func @transform_2(%arg0: i32, %arg1: i32, %arg2: i32) -> (i32, i32) {
    %c0_i32 = arith.constant 0 : i32
    return %arg0, %arg1 : i32, i32
  }
}

</mosaic_0001>

<bundles_post_ra>
// kernel: tpu_custom_call.1
= control target key start
LH: loop header
LB: loop body
LE: loop exit
PB: predicated region body
PF: predicated region fallthrough
CT: control target
= control target key end

     0   :  { %7 = vsyncpa [#allocation4], 0  ;;  %s296_s0 = inlined_call_operand.hbm [shape: bf16[16,32], index: 0, kind: input, shape index: {}]   ;;  %s297_s1 = inlined_call_operand.hbm [shape: bf16[32,64], index: 1, kind: input, shape index: {}]   ;;  %s298_s2 = inlined_call_operand.hbm [shape: bf16[16,64], index: 2, kind: output, shape index: {}]  }
   0x1   :  { %8 = vsyncpa [#allocation7], 0 }
   0x2   :  { %9 = vsyncpa [#allocation5], 0  ;;  %s252_s9 = smov [#allocation3]  }
   0x3   :  { %s15_s10 = sshll.u32 %s252_s9, 4  ;;  %s16_s10 = int_to_ptr.vmem [resolvable:$true] %s15_s10 }
   0x4   :  { %s194_s11 = scalar_lea.vmem %s16_s10, 128  ;;  %p199_p1 = scmp.lt.s32.totalorder %s16_s10, %s16_s10 }
   0x5   :  { %p195_p0 = scmp.ne.s32.totalorder %s16_s10, %s194_s11  ;;  %p200_p2 = scmp.lt.s32.totalorder %s194_s11, %s194_s11 }
   0x7   :  { %p201_p3 = por %p200_p2, %p199_p1 }
   0x9   :  { %p202_p4 = pnand %p201_p3, %p195_p0 }
   0xb   :  { %205 = shalt.err (!%p202_p4)
}
   0xc   :  { %s253_s12 = smov 64   ;;  %s254_s13 = smov 4  }
   0xd   :  { %21 = dma.hbm_to_vmem [thread:$0]  %s296_s0, 128, %s16_s10, [#allocation4], %s253_s12, %s253_s12, %s254_s13  }
   0xe   :  { %s255_s16 = smov [#allocation6]  }
   0xf   :  { %s27_s17 = sshll.u32 %s255_s16, 4  ;;  %s28_s17 = int_to_ptr.vmem [resolvable:$true] %s27_s17 }
  0x10   :  { %s214_s18 = scalar_lea.vmem %s28_s17, 256  ;;  %p219_p6 = scmp.lt.s32.totalorder %s28_s17, %s28_s17 }
  0x11   :  { %p215_p5 = scmp.ne.s32.totalorder %s28_s17, %s214_s18  ;;  %p220_p7 = scmp.lt.s32.totalorder %s214_s18, %s214_s18 }
  0x13   :  { %p221_p8 = por %p220_p7, %p219_p6 }
  0x15   :  { %p222_p9 = pnand %p221_p8, %p215_p5 }
  0x17   :  { %225 = shalt.err (!%p222_p9)
}
  0x18   :  { %33 = dma.hbm_to_vmem [thread:$0]  %s297_s1, 256, %s28_s17, [#allocation7], %s253_s12, %s253_s12, %s254_s13  }
  0x19   :  { %246 = dma.done.wait [#allocation4], 128  }
  0x1a   :  { %247 = vsyncadd [#allocation4], 4294967168 }
  0x1b   :  { %248 = dma.done.wait [#allocation7], 256  }
  0x1c   :  { %249 = vsyncadd [#allocation7], 4294967040  ;;  %vm45_vm0 = vcmask 523264   ;;  %v256_v0 = vmov 0.0   ;;  %vm257_vm1 = vmmov 0   ;;  %v183_v1 = vld [vmem:[#allocation6 + $0x8] sm:$0xff]  }
  0x1d   :  { %46 = vst.msk [vmem:[#allocation2] sm:$0xff] %vm45_vm0, %v256_v0  ;;  %47 = vst.msk [vmem:[#allocation2 + $0x8] sm:$0xff] %vm45_vm0, %v256_v0  ;;  %168 = vmatprep.subr.bf16.mxu0 %v256_v0  ;;  %172 = vmatprep.mubr.msk.bf16.mxu0 %vm257_vm1, %v256_v0  ;;  %v184_v2 = vld [vmem:[#allocation6] sm:$0xff]   ;;  %v185_v3 = vld [vmem:[#allocation3] sm:$0xff]   ;;  %vm73_vm2 = vcmask 261120   ;;  %vm136_vm3 = vcmask 519168  }
  0x1e   :  { %169 = vmatpush3.bf16.msra.mxu0 %v183_v1  ;;  %s258_s0 = smov [#allocation8]  }
  0x1f   :  { %170 = vmatprep.subr.bf16.mxu0 %v256_v0  ;;  %s144_s1 = sshll.u32 %s258_s0, 4  ;;  %s145_s1 = int_to_ptr.vmem [resolvable:$true] %s144_s1 }
  0x20   :  { %s226_s21 = scalar_lea.vmem %s145_s1, 128  ;;  %p231_p11 = scmp.lt.s32.totalorder %s145_s1, %s145_s1 }
  0x21   :  { %p227_p10 = scmp.ne.s32.totalorder %s145_s1, %s226_s21  ;;  %p232_p12 = scmp.lt.s32.totalorder %s226_s21, %s226_s21 }
  0x22   :  { %171 = vmatpush3.bf16.msra.mxu0 %v184_v2 }
  0x23   :  { %p233_p13 = por %p232_p12, %p231_p11 }
  0x24   :  { %v48_v4 = vld [vmem:[#allocation2] sm:$0xff]  ;;  %v49_v8 = vld [vmem:[#allocation2 + $0x8] sm:$0xff] }
  0x25   :  { %173 = vmatmul.mubr.msk.bf16.vlgmr.msra.gmra.mxu0 %vm73_vm2, %v185_v3  ;;  %p234_p0 = pnand %p233_p13, %p227_p10 }
  0xe5   :  { %v111_v5 = vpop.f32.mrf.mxu0 }
  0xe6   :  { %v118_v6 = vadd.f32 %v111_v5, %v48_v4 }
  0xe7   :  { %v174_v7 = vpop.f32.mrf.mxu0 }
  0xe8   :  { %121 = vst.msk [vmem:[#allocation2] sm:$0xff] %vm45_vm0, %v118_v6 }
  0xe9   :  { %v114_v9 = vpop.f32.mrf.mxu0 }
  0xea   :  { %v119_v10 = vadd.f32 %v114_v9, %v49_v8 }
  0xeb   :  { %v175_v11 = vpop.f32.mrf.mxu0 }
  0xec   :  { %122 = vst.msk [vmem:[#allocation2 + $0x8] sm:$0xff] %vm45_vm0, %v119_v10 }
  0xef   :  { %v126_v12 = vld [vmem:[#allocation2] sm:$0xff] }
  0xf0   :  { %v163_v13 = vpack.c.bf16 %v126_v12, %v126_v12 }
  0xf2   :  { %137 = vst.msk [vmem:[#allocation8] sm:$0xf] %vm136_vm3, %v163_v13 }
  0xf3   :  { %v127_v14 = vld [vmem:[#allocation2 + $0x8] sm:$0xff] }
  0xf4   :  { %v164_v15 = vpack.c.bf16 %v127_v14, %v127_v14 }
  0xf6   :  { %138 = vst.msk [vmem:[#allocation8 + $0x4] sm:$0xf] %vm136_vm3, %v164_v15 }
  0xf7   :  { %237 = shalt.err (!%p234_p0)
}
  0xf8   :  { %150 = dma.vmem_to_hbm [thread:$0]  %s145_s1, 128, %s298_s2, [#allocation5], %s253_s12, %s253_s12, %s254_s13  }
  0xf9   :  { %250 = dma.done.wait [#allocation5], 128  }
  0xfa   :  { %251 = vsyncadd [#allocation5], 4294967168 }
  0xfb   :  { %154 = vsyncpa [#allocation4], 1 }
  0xfc   :  { %155 = vsyncpa [#allocation7], 1 }
  0xfd   :  { %156 = vsyncpa [#allocation5], 1 }

</bundles_post_ra>
